<compile_context>
chip_gen: v5e
topology: v5e:2x2
jax: 0.10.0
libtpu: 0.0.40
codegen_flags: <defaults>
</compile_context>

<pallas_src>
import jax
import jax.numpy as jnp
from jax.experimental import pallas as pl
from jax.experimental.pallas import tpu as pltpu

IN_FEATURES = 20
HIDDEN_FEATURES = 256
OUT_FEATURES = 10

LANE = 128
SUBLANE = 8
TILE_B_MAX = 4096                    # ~few MiB/tile even in f32; far from VMEM limit
VMEM_LIMIT_BYTES = 48 * 1024 * 1024  # generous but < v7x 64 MiB physical VMEM


def _round_up(x, m):
    return (x + m - 1) // m * m


def mlp_kernel(x_ref, w1_ref, b1_ref, w2_ref, b2_ref, o_ref):
    # hidden = relu(X @ W1 + b1): MXU matmul with f32 accumulation,
    # bias add + ReLU in f32 on the VPU (huge slack under the DMAs).
    h = jnp.dot(x_ref[...], w1_ref[...], preferred_element_type=jnp.float32)
    h = jnp.maximum(h + b1_ref[...], 0.0)
    # out = hidden @ W2 + b2: cast only at the MXU boundary (no-op for f32 path).
    o = jnp.dot(h.astype(w2_ref.dtype), w2_ref[...],
                preferred_element_type=jnp.float32)
    o_ref[...] = (o + b2_ref[...]).astype(o_ref.dtype)


def prepare_params(w1, b1, w2, b2, *, mxu_dtype=jnp.bfloat16):
    """One-time cast/reshape of the static parameters (pay this once, not per call)."""
    return (w1.astype(mxu_dtype),
            b1.astype(jnp.float32).reshape(1, HIDDEN_FEATURES),
            w2.astype(mxu_dtype),
            b2.astype(jnp.float32).reshape(1, OUT_FEATURES))


def _choose_tile_b(batch, tile_b_max):
    if batch <= LANE:
        # Small/inference batch: single step, sublane-aligned (no 128-row junk).
        return _round_up(max(batch, 1), SUBLANE)
    # Large batch: make the grid have >= 2 steps so the "parallel" batch axis
    # can shard across both v7x TensorCores, capped by tile_b_max.
    b_target = _round_up(batch, LANE)
    return min(tile_b_max, _round_up(pl.cdiv(b_target, 2), LANE))


def mlp_forward(x, params, *, tile_b_max=TILE_B_MAX):
    """x: (B, 20); params: output of prepare_params()."""
    w1, b1, w2, b2 = params
    mxu_dtype = w1.dtype
    batch = x.shape[0]
    out_dtype = x.dtype

    tile_b = _choose_tile_b(batch, tile_b_max)
    b_pad = _round_up(batch, tile_b)
    grid = (b_pad // tile_b,)

    # Only the batch dim is padded (zeros); feature dims stay 20 / 10.
    x_in = x.astype(mxu_dtype)
    if b_pad != batch:
        x_in = jnp.pad(x_in, ((0, b_pad - batch), (0, 0)))

    out = pl.pallas_call(
        mlp_kernel,
        out_shape=jax.ShapeDtypeStruct((b_pad, OUT_FEATURES), out_dtype),
        grid=grid,
        in_specs=[
            pl.BlockSpec((tile_b, IN_FEATURES), lambda i: (i, 0)),            # x: batch-tiled
            pl.BlockSpec((IN_FEATURES, HIDDEN_FEATURES), lambda i: (0, 0)),   # w1: resident
            pl.BlockSpec((1, HIDDEN_FEATURES), lambda i: (0, 0)),             # b1: resident
            pl.BlockSpec((HIDDEN_FEATURES, OUT_FEATURES), lambda i: (0, 0)),  # w2: resident
            pl.BlockSpec((1, OUT_FEATURES), lambda i: (0, 0)),                # b2: resident
        ],
        out_specs=pl.BlockSpec((tile_b, OUT_FEATURES), lambda i: (i, 0)),
        compiler_params=pltpu.CompilerParams(
            dimension_semantics=("parallel",),
            vmem_limit_bytes=VMEM_LIMIT_BYTES,
        ),
    )(x_in, w1, b1, w2, b2)

    return out if b_pad == batch else out[:batch]


def init_params(key, in_f=IN_FEATURES, hidden_f=HIDDEN_FEATURES,
                out_f=OUT_FEATURES, dtype=jnp.float32):
    """Deterministic init mimicking nn.Linear's uniform(-1/sqrt(fan_in), ...)."""
    k1, k2, k3, k4 = jax.random.split(key, 4)
    bound1 = 1.0 / jnp.sqrt(in_f)
    bound2 = 1.0 / jnp.sqrt(hidden_f)
    # PyTorch stores weight as (out, in); we keep the (in, out) transpose.
    w1 = jax.random.uniform(k1, (in_f, hidden_f), dtype, -bound1, bound1)
    b1 = jax.random.uniform(k2, (hidden_f,), dtype, -bound1, bound1)
    w2 = jax.random.uniform(k3, (hidden_f, out_f), dtype, -bound2, bound2)
    b2 = jax.random.uniform(k4, (out_f,), dtype, -bound2, bound2)
    return w1, b1, w2, b2


def _reference(x, w1, b1, w2, b2):
    return jnp.maximum(x @ w1 + b1, 0.0) @ w2 + b2


if __name__ == "__main__":
    key = jax.random.PRNGKey(0)
    kx, kx2, kp = jax.random.split(key, 3)
    w1, b1, w2, b2 = init_params(kp)

    # f32 operand path: tight-tolerance reference check, small (inference-style) batch.
    params_f32 = prepare_params(w1, b1, w2, b2, mxu_dtype=jnp.float32)
    batch = 8
    x = jax.random.normal(kx, (batch, IN_FEATURES), jnp.float32)
    out = jax.block_until_ready(mlp_forward(x, params_f32))
    ref = _reference(x, w1, b1, w2, b2)
    assert out.shape == (batch, OUT_FEATURES)
    assert jnp.allclose(out, ref, atol=1e-5, rtol=1e-5), "f32 mismatch vs reference"

    # Larger batch exercising the multi-step batch grid (tile_b=128 -> 3 steps).
    batch2 = 300
    x2 = jax.random.normal(kx2, (batch2, IN_FEATURES), jnp.float32)
    out2 = jax.block_until_ready(mlp_forward(x2, params_f32, tile_b_max=128))
    ref2 = _reference(x2, w1, b1, w2, b2)
    assert out2.shape == (batch2, OUT_FEATURES)
    assert jnp.allclose(out2, ref2, atol=1e-5, rtol=1e-5), "tiled f32 mismatch"

    # Production default: bf16 operands (f32 accumulation), 2-step parallel grid.
    params_bf16 = prepare_params(w1, b1, w2, b2)
    out_bf16 = jax.block_until_ready(mlp_forward(x2, params_bf16))
    assert out_bf16.shape == (batch2, OUT_FEATURES)
    assert jnp.allclose(out_bf16, ref2, atol=5e-2, rtol=5e-2), "bf16 mismatch"

    print("KERNEL_OK")
</pallas_src>

<mosaic_0001>
module attributes {stable_mosaic.version = 11 : i64} {
  func.func @mlp_kernel(%arg0: i32, %arg1: memref<8x20xf32, #tpu.memory_space<vmem>>, %arg2: memref<20x256xf32, #tpu.memory_space<vmem>>, %arg3: memref<1x256xf32, #tpu.memory_space<vmem>>, %arg4: memref<256x10xf32, #tpu.memory_space<vmem>>, %arg5: memref<1x10xf32, #tpu.memory_space<vmem>>, %arg6: memref<8x10xf32, #tpu.memory_space<vmem>>) attributes {dimension_semantics = [#tpu.dimension_semantics<parallel>], iteration_bounds = array<i64: 1>, scalar_prefetch = 0 : i64, scratch_operands = 0 : i64, tpu.core_type = #tpu.core_type<tc>, window_params = [{transform_indices = @transform_0, window_bounds = array<i64: 8, 20>}, {pipeline_mode = #tpu.pipeline_mode<synchronous>, transform_indices = @transform_1, window_bounds = array<i64: 20, 256>}, {pipeline_mode = #tpu.pipeline_mode<synchronous>, transform_indices = @transform_2, window_bounds = array<i64: 1, 256>}, {pipeline_mode = #tpu.pipeline_mode<synchronous>, transform_indices = @transform_3, window_bounds = array<i64: 256, 10>}, {pipeline_mode = #tpu.pipeline_mode<synchronous>, transform_indices = @transform_4, window_bounds = array<i64: 1, 10>}, {transform_indices = @transform_5, window_bounds = array<i64: 8, 10>}]} {
    %c0 = arith.constant 0 : index
    %c0_0 = arith.constant 0 : index
    %0 = vector.load %arg1[%c0, %c0_0] : memref<8x20xf32, #tpu.memory_space<vmem>>, vector<8x20xf32>
    %c0_1 = arith.constant 0 : index
    %c0_2 = arith.constant 0 : index
    %1 = vector.load %arg2[%c0_1, %c0_2] : memref<20x256xf32, #tpu.memory_space<vmem>>, vector<20x256xf32>
    %cst = arith.constant dense<0.000000e+00> : vector<8x256xf32>
    %2 = tpu.matmul %0, %1, %cst {dimension_numbers = #tpu.dot_dimension_numbers<[1], [0], [0], [1], [0, 0, 1, 1], [], []>} : vector<8x20xf32>, vector<20x256xf32>, vector<8x256xf32> -> vector<8x256xf32>
    %c0_3 = arith.constant 0 : index
    %c0_4 = arith.constant 0 : index
    %3 = vector.load %arg3[%c0_3, %c0_4] : memref<1x256xf32, #tpu.memory_space<vmem>>, vector<1x256xf32>
    %4 = vector.broadcast %3 : vector<1x256xf32> to vector<8x256xf32>
    %5 = arith.addf %2, %4 : vector<8x256xf32>
    %cst_5 = arith.constant 0.000000e+00 : f32
    %6 = vector.broadcast %cst_5 : f32 to vector<8x256xf32>
    %7 = arith.maximumf %5, %6 : vector<8x256xf32>
    %c0_6 = arith.constant 0 : index
    %c0_7 = arith.constant 0 : index
    %8 = vector.load %arg4[%c0_6, %c0_7] : memref<256x10xf32, #tpu.memory_space<vmem>>, vector<256x10xf32>
    %cst_8 = arith.constant dense<0.000000e+00> : vector<8x10xf32>
    %9 = tpu.matmul %7, %8, %cst_8 {dimension_numbers = #tpu.dot_dimension_numbers<[1], [0], [0], [1], [0, 0, 1, 1], [], []>} : vector<8x256xf32>, vector<256x10xf32>, vector<8x10xf32> -> vector<8x10xf32>
    %c0_9 = arith.constant 0 : index
    %c0_10 = arith.constant 0 : index
    %10 = vector.load %arg5[%c0_9, %c0_10] : memref<1x10xf32, #tpu.memory_space<vmem>>, vector<1x10xf32>
    %11 = vector.broadcast %10 : vector<1x10xf32> to vector<8x10xf32>
    %12 = arith.addf %9, %11 : vector<8x10xf32>
    %c0_11 = arith.constant 0 : index
    %c0_12 = arith.constant 0 : index
    %13 = vector.load %arg6[%c0_11, %c0_12] : memref<8x10xf32, #tpu.memory_space<vmem>>, vector<8x10xf32>
    tpu.vector_store %arg6[%c0_11, %c0_12], %12 {strides = array<i32>} : memref<8x10xf32, #tpu.memory_space<vmem>>, vector<8x10xf32>,
    return
  }
  func.func @transform_0(%arg0: i32) -> (i32, i32) {
    %c0_i32 = arith.constant 0 : i32
    %c0_i32_0 = arith.constant 0 : i32
    return %arg0, %c0_i32 : i32, i32
  }
  func.func @transform_1(%arg0: i32) -> (i32, i32) {
    %c0_i32 = arith.constant 0 : i32
    %c0_i32_0 = arith.constant 0 : i32
    %c0_i32_1 = arith.constant 0 : i32
    return %c0_i32, %c0_i32_0 : i32, i32
  }
  func.func @transform_2(%arg0: i32) -> (i32, i32) {
    %c0_i32 = arith.constant 0 : i32
    %c0_i32_0 = arith.constant 0 : i32
    %c0_i32_1 = arith.constant 0 : i32
    return %c0_i32, %c0_i32_0 : i32, i32
  }
  func.func @transform_3(%arg0: i32) -> (i32, i32) {
    %c0_i32 = arith.constant 0 : i32
    %c0_i32_0 = arith.constant 0 : i32
    %c0_i32_1 = arith.constant 0 : i32
    return %c0_i32, %c0_i32_0 : i32, i32
  }
  func.func @transform_4(%arg0: i32) -> (i32, i32) {
    %c0_i32 = arith.constant 0 : i32
    %c0_i32_0 = arith.constant 0 : i32
    %c0_i32_1 = arith.constant 0 : i32
    return %c0_i32, %c0_i32_0 : i32, i32
  }
  func.func @transform_5(%arg0: i32) -> (i32, i32) {
    %c0_i32 = arith.constant 0 : i32
    %c0_i32_0 = arith.constant 0 : i32
    return %arg0, %c0_i32 : i32, i32
  }
}

</mosaic_0001>

<bundles_post_ra>
// kernel: tpu_custom_call.1
= control target key start
LH: loop header
LB: loop body
LE: loop exit
PB: predicated region body
PF: predicated region fallthrough
CT: control target
= control target key end

     0   :  { %vm38_vm0 = vcmask 1043456   ;;  %vm34_vm1 = vcmask 162816   ;;  %s370_s0 = inlined_call_operand.vmem [shape: f32[8,20], index: 0, kind: input, shape index: {}]   ;;  %s371_s1 = inlined_call_operand.vmem [shape: f32[20,256], index: 1, kind: input, shape index: {}]   ;;  %s372_s2 = inlined_call_operand.vmem [shape: f32[1,256], index: 2, kind: input, shape index: {}]   ;;  %s373_s3 = inlined_call_operand.vmem [shape: f32[256,10], index: 3, kind: input, shape index: {}]   ;;  %s374_s4 = inlined_call_operand.vmem [shape: f32[1,10], index: 4, kind: input, shape index: {}]   ;;  %s375_s5 = inlined_call_operand.hbm [shape: f32[8,10], index: 5, kind: output, shape index: {}]  }
   0x1   :  { %v26_v0 = vld [vmem:[%s371_s1 + $0x20] sm:$0xf]  ;;  %v24_v1 = vld [vmem:[%s371_s1 + $0x10] sm:$0xff]  ;;  %v27_v2 = vld [vmem:[%s371_s1 + $0x28] sm:$0xf] }
   0x2   :  { %181 = vmatpush.msk.msra.mxu0 %vm38_vm0, %v26_v0  ;;  %183 = vmatpush.msk.msra.mxu1 %vm38_vm0, %v27_v2  ;;  %v25_v3 = vld [vmem:[%s371_s1 + $0x18] sm:$0xff]  ;;  %v22_v4 = vld [vmem:[%s371_s1] sm:$0xff]  ;;  %v23_v5 = vld [vmem:[%s371_s1 + $0x8] sm:$0xff] }
   0x3   :  { %v102_v6 = vld [vmem:[%s373_s3 + $0x78] sm:$0xff]  ;;  %v21_v7 = vld [vmem:[%s370_s0] sm:$0xff]  ;;  %v101_v9 = vld [vmem:[%s373_s3 + $0x70] sm:$0xff] }
   0x4   :  { %59 = vmatpush.msra.mxu0 %v24_v1  ;;  %79 = vmatpush.msra.mxu1 %v25_v3  ;;  %v118_v8 = vld [vmem:[%s373_s3 + $0xf8] sm:$0xff]  ;;  %v117_v10 = vld [vmem:[%s373_s3 + $0xf0] sm:$0xff]  ;;  %v100_v11 = vld [vmem:[%s373_s3 + $0x68] sm:$0xff] }
   0x5   :  { %123 = vmatpush.msra.mxu2 %v102_v6  ;;  %143 = vmatpush.msra.mxu3 %v118_v8  ;;  %v116_v12 = vld [vmem:[%s373_s3 + $0xe8] sm:$0xff]  ;;  %v99_v13 = vld [vmem:[%s373_s3 + $0x60] sm:$0xff]  ;;  %v98_v15 = vld [vmem:[%s373_s3 + $0x58] sm:$0xff] }
   0x6   :  { %60 = vmatpush.msra.mxu0 %v22_v4  ;;  %80 = vmatpush.msra.mxu1 %v23_v5  ;;  %v115_v14 = vld [vmem:[%s373_s3 + $0xe0] sm:$0xff]  ;;  %v114_v16 = vld [vmem:[%s373_s3 + $0xd8] sm:$0xff] }
   0x7   :  { %182 = vmatmul.msk.f32.vlgmr.msra.gmra.mxu0 %vm34_vm1, %v21_v7  ;;  %184 = vmatmul.msk.f32.vlgmr.msra.gmra.mxu1 %vm34_vm1, %v21_v7 }
   0x8   :  { %124 = vmatpush.msra.mxu2 %v101_v9  ;;  %144 = vmatpush.msra.mxu3 %v117_v10 }
   0xa   :  { %125 = vmatpush.msra.mxu2 %v100_v11  ;;  %145 = vmatpush.msra.mxu3 %v116_v12 }
   0xc   :  { %126 = vmatpush.msra.mxu2 %v99_v13  ;;  %146 = vmatpush.msra.mxu3 %v115_v14 }
   0xd   :  { %10 = vsyncpa [#allocation3], 0  ;;  %v97_v17 = vld [vmem:[%s373_s3 + $0x50] sm:$0xff]  ;;  %v96_v19 = vld [vmem:[%s373_s3 + $0x48] sm:$0xff]  ;;  %s172_s21 = sshll.u32 %s375_s5, 4  ;;  %vm163_vm2 = vcmask 80896   ;;  %s173_s21 = int_to_ptr.hbm [resolvable:$true] %s172_s21 }
   0xe   :  { %v113_v18 = vld [vmem:[%s373_s3 + $0xd0] sm:$0xff]  ;;  %127 = vmatpush.msra.mxu2 %v98_v15  ;;  %147 = vmatpush.msra.mxu3 %v114_v16  ;;  %v112_v20 = vld [vmem:[%s373_s3 + $0xc8] sm:$0xff]  ;;  %v95_v21 = vld [vmem:[%s373_s3 + $0x40] sm:$0xff] }
   0xf   :  { %v111_v22 = vld [vmem:[%s373_s3 + $0xc0] sm:$0xff]  ;;  %v94_v23 = vld [vmem:[%s373_s3 + $0x38] sm:$0xff]  ;;  %v93_v25 = vld [vmem:[%s373_s3 + $0x30] sm:$0xff] }
  0x10   :  { %128 = vmatpush.msra.mxu2 %v97_v17  ;;  %148 = vmatpush.msra.mxu3 %v113_v18  ;;  %v110_v24 = vld [vmem:[%s373_s3 + $0xb8] sm:$0xff]  ;;  %v109_v26 = vld [vmem:[%s373_s3 + $0xb0] sm:$0xff]  ;;  %v92_v27 = vld [vmem:[%s373_s3 + $0x28] sm:$0xff] }
  0x11   :  { %v108_v28 = vld [vmem:[%s373_s3 + $0xa8] sm:$0xff]  ;;  %v91_v29 = vld [vmem:[%s373_s3 + $0x20] sm:$0xff]  ;;  %v90_v31 = vld [vmem:[%s373_s3 + $0x18] sm:$0xff] }
  0x12   :  { %129 = vmatpush.msra.mxu2 %v96_v19  ;;  %149 = vmatpush.msra.mxu3 %v112_v20  ;;  %v107_v30 = vld [vmem:[%s373_s3 + $0xa0] sm:$0xff]  ;;  %v89_v32 = vld [vmem:[%s373_s3 + $0x10] sm:$0xff]  ;;  %v106_v33 = vld [vmem:[%s373_s3 + $0x98] sm:$0xff] }
  0x13   :  { %v88_v34 = vld [vmem:[%s373_s3 + $0x8] sm:$0xff]  ;;  %v105_v35 = vld [vmem:[%s373_s3 + $0x90] sm:$0xff]  ;;  %v87_v36 = vld [vmem:[%s373_s3] sm:$0xff] }
  0x14   :  { %130 = vmatpush.msra.mxu2 %v95_v21  ;;  %150 = vmatpush.msra.mxu3 %v111_v22  ;;  %v104_v37 = vld [vmem:[%s373_s3 + $0x88] sm:$0xff]  ;;  %v103_v38 = vld [vmem:[%s373_s3 + $0x80] sm:$0xff]  ;;  %s213_s3 = smov [#allocation2]  }
  0x15   :  { %v28_v39 = vld [vmem:[%s372_s2] sm:$0x3]  ;;  %s170_s19 = sshll.u32 %s213_s3, 4  ;;  %s171_s19 = int_to_ptr.vmem [resolvable:$true] %s170_s19 }
  0x16   :  { %131 = vmatpush.msra.mxu2 %v94_v23  ;;  %151 = vmatpush.msra.mxu3 %v110_v24  ;;  %v30_v40 = vperm.slane %v28_v39, 0  ;;  %v31_v41 = vperm.slane %v28_v39, 1  ;;  %v186_v48 = vld [vmem:[%s374_s4] ss:$0 sm:$0xff] }
  0x18   :  { %132 = vmatpush.msra.mxu2 %v93_v25  ;;  %152 = vmatpush.msra.mxu3 %v109_v26 }
  0x1a   :  { %133 = vmatpush.msra.mxu2 %v92_v27  ;;  %153 = vmatpush.msra.mxu3 %v108_v28 }
  0x1c   :  { %134 = vmatpush.msra.mxu2 %v91_v29  ;;  %154 = vmatpush.msra.mxu3 %v107_v30 }
  0x1e   :  { %135 = vmatpush.msra.mxu2 %v90_v31  ;;  %155 = vmatpush.msra.mxu3 %v106_v33 }
  0x20   :  { %136 = vmatpush.msra.mxu2 %v89_v32  ;;  %156 = vmatpush.msra.mxu3 %v105_v35 }
  0x22   :  { %137 = vmatpush.msra.mxu2 %v88_v34  ;;  %157 = vmatpush.msra.mxu3 %v104_v37 }
  0x24   :  { %138 = vmatpush.msra.mxu2 %v87_v36  ;;  %158 = vmatpush.msra.mxu3 %v103_v38 }
  0x84   :  { %v62_v42 = vpop.f32.mrf.mxu0  ;;  %v82_v43 = vpop.f32.mrf.mxu1 }
  0x85   :  { %v63_v44 = vadd.f32 %v62_v42, %v30_v40  ;;  %v83_v45 = vadd.f32 %v82_v43, %v31_v41 }
  0x87   :  { %v85_v46 = vmax.f32 %v63_v44, 0.0  ;;  %v86_v47 = vmax.f32 %v83_v45, 0.0 }
  0x89   :  { %139 = vmatmul.f32.vlgmr.msra.gmra.mxu2 %v85_v46  ;;  %159 = vmatmul.f32.vlgmr.msra.gmra.mxu3 %v86_v47 }
 0x10c   :  { %v140_v49 = vpop.f32.mrf.mxu2  ;;  %v160_v50 = vpop.f32.mrf.mxu3 }
 0x10d   :  { %v141_v51 = vadd.f32 %v186_v48, %v140_v49 }
 0x10f   :  { %v161_v52 = vadd.f32 %v160_v50, %v141_v51 }
 0x111   :  { %164 = vst.msk [vmem:[#allocation2] sm:$0xff] %vm163_vm2, %v161_v52 }
 0x112   :  { %175 = dma.vmem_to_hbm [thread:$0]  %s171_s19, 128, %s173_s21, [#allocation3]  }
 0x113   :  { %211 = dma.done.wait [#allocation3], 128  }
 0x114   :  { %212 = vsyncadd [#allocation3], 4294967168 }
 0x115   :  { %180 = vsyncpa [#allocation3], 1 }

</bundles_post_ra>
